<compile_context>
chip_gen: v6e
topology: v6e:2x2x1
jax: 0.10.0
libtpu: 0.0.40
codegen_flags: <defaults>
</compile_context>

<pallas_src>
import math

import jax
import jax.numpy as jnp
from jax.experimental import pallas as pl
from jax.experimental.pallas import tpu as pltpu

INPUT_DIM = 784
HIDDEN_DIMS = (128, 64)
OUTPUT_DIM = 5

# Lane-aligned (padded) dims used inside the kernel.
H1_PAD = 128    # already lane-aligned
H2_PAD = 128    # 64 padded to 128
OUT_PAD = 128   # 5 padded to 128

TILE_B_MAX = 2048  # bigger batch tiles -> >90% of HBM roofline; ~9 MiB VMEM footprint


def _round_up(x, m):
    return ((x + m - 1) // m) * m


def _pad2(a, rows, cols):
    """Zero-pad a 2D array up to (rows, cols). Exact zeros -> results unchanged."""
    return jnp.pad(a, ((0, rows - a.shape[0]), (0, cols - a.shape[1])))


def _mlp_kernel(x_ref, w1_ref, b1_ref, w2_ref, b2_ref, w3_ref, b3_ref, o_ref):
    # Hidden layer 1: bf16 x bf16 matmul on the MXU, f32 accumulate, f32 bias + ReLU.
    h1 = jnp.dot(x_ref[...], w1_ref[...], preferred_element_type=jnp.float32)
    h1 = jnp.maximum(h1 + b1_ref[...], 0.0)
    # Hidden layer 2 (padded columns stay exactly zero: zero weight cols + zero bias).
    h2 = jnp.dot(h1.astype(jnp.bfloat16), w2_ref[...],
                 preferred_element_type=jnp.float32)
    h2 = jnp.maximum(h2 + b2_ref[...], 0.0)
    # Output layer: Linear (logits, no activation). Lane-dense 128-wide store.
    logits = jnp.dot(h2.astype(jnp.bfloat16), w3_ref[...],
                     preferred_element_type=jnp.float32)
    o_ref[...] = (logits + b3_ref[...]).astype(o_ref.dtype)


def mlp_forward(x, params):
    """x: (B, 784) float. params: dict of w1,b1,w2,b2,w3,b3 stored as (in_dim, out_dim).
    Returns (B, 5) float32 logits."""
    B, D = x.shape
    assert D == INPUT_DIM

    # bf16 stream for the dominant HBM read.  Ideally the producer already emits
    # bf16 (or XLA fuses this cast); if x is already bf16 this is a no-op.
    x_bf = x if x.dtype == jnp.bfloat16 else x.astype(jnp.bfloat16)

    # Weights -> bf16 (tiny, one-time).  Biases stay f32 (added post-accumulation).
    w1 = _pad2(params["w1"], INPUT_DIM, H1_PAD).astype(jnp.bfloat16)   # (784, 128), no pad
    b1 = _pad2(params["b1"], 1, H1_PAD).astype(jnp.float32)
    w2 = _pad2(params["w2"], H1_PAD, H2_PAD).astype(jnp.bfloat16)       # (128, 128)
    b2 = _pad2(params["b2"], 1, H2_PAD).astype(jnp.float32)
    w3 = _pad2(params["w3"], H2_PAD, OUT_PAD).astype(jnp.bfloat16)      # (128, 128)
    b3 = _pad2(params["b3"], 1, OUT_PAD).astype(jnp.float32)

    # Batch tile: multiple of 16 (bf16 sublane packing), split ~2 ways so both
    # v7x TensorCores get grid steps, capped at TILE_B_MAX.  No batch round-up:
    # cdiv grid + partial tail block (tail rows are discarded by the slice below).
    tile_b = min(TILE_B_MAX, _round_up(pl.cdiv(max(B, 1), 2), 16))
    grid_b = pl.cdiv(B, tile_b)

    # x / out tiled over batch; weights & biases use constant index_maps so they
    # are DMA'd once and stay VMEM-resident across all grid steps.
    x_spec = pl.BlockSpec((tile_b, INPUT_DIM), lambda i: (i, 0))
    out_spec = pl.BlockSpec((tile_b, OUT_PAD), lambda i: (i, 0))
    const = lambda shape: pl.BlockSpec(shape, lambda i: (0, 0))

    flops = 2 * B * (INPUT_DIM * H1_PAD + H1_PAD * H2_PAD + H2_PAD * OUT_PAD)
    weight_bytes = (INPUT_DIM * H1_PAD + H1_PAD * H2_PAD + H2_PAD * OUT_PAD) * 2 \
        + 3 * OUT_PAD * 4
    bytes_accessed = B * INPUT_DIM * 2 + weight_bytes + B * OUT_PAD * 2

    out_padded = pl.pallas_call(
        _mlp_kernel,
        out_shape=jax.ShapeDtypeStruct((B, OUT_PAD), jnp.bfloat16),
        grid=(grid_b,),
        in_specs=[
            x_spec,
            const((INPUT_DIM, H1_PAD)), const((1, H1_PAD)),
            const((H1_PAD, H2_PAD)), const((1, H2_PAD)),
            const((H2_PAD, OUT_PAD)), const((1, OUT_PAD)),
        ],
        out_specs=out_spec,
        compiler_params=pltpu.CompilerParams(
            dimension_semantics=("parallel",),   # shard batch tiles across TCs (v7x)
            vmem_limit_bytes=32 << 20,           # ~9 MiB actual footprint at tile_b=2048
        ),
        cost_estimate=pl.CostEstimate(
            flops=flops, transcendentals=0, bytes_accessed=bytes_accessed),
    )(x_bf, w1, b1, w2, b2, w3, b3)

    # Strip lane padding of the logits and return f32 (touches only (B,5) data).
    return out_padded[:B, :OUTPUT_DIM].astype(jnp.float32)


def init_params(key):
    """Deterministic init mimicking PyTorch nn.Linear default: U(-1/sqrt(fan_in), 1/sqrt(fan_in)).
    Weights stored as (in_dim, out_dim) so the kernel computes x @ W + b."""
    dims = (INPUT_DIM,) + HIDDEN_DIMS + (OUTPUT_DIM,)
    params = {}
    for i, (fan_in, fan_out) in enumerate(zip(dims[:-1], dims[1:]), start=1):
        key, kw, kb = jax.random.split(key, 3)
        bound = 1.0 / math.sqrt(fan_in)
        params[f"w{i}"] = jax.random.uniform(
            kw, (fan_in, fan_out), jnp.float32, minval=-bound, maxval=bound)
        params[f"b{i}"] = jax.random.uniform(
            kb, (1, fan_out), jnp.float32, minval=-bound, maxval=bound)
    return params


def torch_mlp_forward(x, params):
    """Matches TorchMLP.forward: flatten trailing dims if x.ndim > 2, then MLP."""
    if x.ndim > 2:
        x = x.reshape(x.shape[0], -1)
    return mlp_forward(x, params)


if __name__ == "__main__":
    key = jax.random.PRNGKey(0)
    key, kx = jax.random.split(key)
    params = init_params(key)

    # Small example input consistent with the module: batch of 8 flattened 28x28 "images".
    x = jax.random.normal(kx, (8, 1, 28, 28), dtype=jnp.float32)

    logits = torch_mlp_forward(x, params)
    jax.block_until_ready(logits)

    # Sanity check against a plain-JAX f32 reference of the same forward pass.
    # Tolerance loosened for the intentional bf16 cast of x / weights (f32 accumulation kept).
    xf = x.reshape(x.shape[0], -1)
    h = jnp.maximum(xf @ params["w1"] + params["b1"], 0.0)
    h = jnp.maximum(h @ params["w2"] + params["b2"], 0.0)
    ref = h @ params["w3"] + params["b3"]
    assert logits.shape == (8, OUTPUT_DIM)
    assert jnp.allclose(logits, ref, atol=5e-2, rtol=5e-2)

    print("KERNEL_OK")
</pallas_src>

<mosaic_0001>
module attributes {stable_mosaic.version = 11 : i64} {
  func.func @_mlp_kernel(%arg0: i32, %arg1: memref<16x784xbf16, #tpu.memory_space<vmem>>, %arg2: memref<784x128xbf16, #tpu.memory_space<vmem>>, %arg3: memref<1x128xf32, #tpu.memory_space<vmem>>, %arg4: memref<128x128xbf16, #tpu.memory_space<vmem>>, %arg5: memref<1x128xf32, #tpu.memory_space<vmem>>, %arg6: memref<128x128xbf16, #tpu.memory_space<vmem>>, %arg7: memref<1x128xf32, #tpu.memory_space<vmem>>, %arg8: memref<16x128xbf16, #tpu.memory_space<vmem>>) attributes {dimension_semantics = [#tpu.dimension_semantics<parallel>], iteration_bounds = array<i64: 1>, scalar_prefetch = 0 : i64, scratch_operands = 0 : i64, tpu.core_type = #tpu.core_type<tc>, window_params = [{transform_indices = @transform_0, window_bounds = array<i64: 16, 784>}, {pipeline_mode = #tpu.pipeline_mode<synchronous>, transform_indices = @transform_1, window_bounds = array<i64: 784, 128>}, {pipeline_mode = #tpu.pipeline_mode<synchronous>, transform_indices = @transform_2, window_bounds = array<i64: 1, 128>}, {pipeline_mode = #tpu.pipeline_mode<synchronous>, transform_indices = @transform_3, window_bounds = array<i64: 128, 128>}, {pipeline_mode = #tpu.pipeline_mode<synchronous>, transform_indices = @transform_4, window_bounds = array<i64: 1, 128>}, {pipeline_mode = #tpu.pipeline_mode<synchronous>, transform_indices = @transform_5, window_bounds = array<i64: 128, 128>}, {pipeline_mode = #tpu.pipeline_mode<synchronous>, transform_indices = @transform_6, window_bounds = array<i64: 1, 128>}, {transform_indices = @transform_7, window_bounds = array<i64: 16, 128>}]} {
    %c0 = arith.constant 0 : index
    %c0_0 = arith.constant 0 : index
    %0 = vector.load %arg1[%c0, %c0_0] : memref<16x784xbf16, #tpu.memory_space<vmem>>, vector<16x784xbf16>
    %c0_1 = arith.constant 0 : index
    %c0_2 = arith.constant 0 : index
    %1 = vector.load %arg2[%c0_1, %c0_2] : memref<784x128xbf16, #tpu.memory_space<vmem>>, vector<784x128xbf16>
    %cst = arith.constant dense<0.000000e+00> : vector<16x128xf32>
    %2 = tpu.matmul %0, %1, %cst {dimension_numbers = #tpu.dot_dimension_numbers<[1], [0], [0], [1], [0, 0, 1, 1], [], []>} : vector<16x784xbf16>, vector<784x128xbf16>, vector<16x128xf32> -> vector<16x128xf32>
    %c0_3 = arith.constant 0 : index
    %c0_4 = arith.constant 0 : index
    %3 = vector.load %arg3[%c0_3, %c0_4] : memref<1x128xf32, #tpu.memory_space<vmem>>, vector<1x128xf32>
    %4 = vector.broadcast %3 : vector<1x128xf32> to vector<16x128xf32>
    %5 = arith.addf %2, %4 : vector<16x128xf32>
    %cst_5 = arith.constant 0.000000e+00 : f32
    %6 = vector.broadcast %cst_5 : f32 to vector<16x128xf32>
    %7 = arith.maximumf %5, %6 : vector<16x128xf32>
    %8 = arith.truncf %7 : vector<16x128xf32> to vector<16x128xbf16>
    %c0_6 = arith.constant 0 : index
    %c0_7 = arith.constant 0 : index
    %9 = vector.load %arg4[%c0_6, %c0_7] : memref<128x128xbf16, #tpu.memory_space<vmem>>, vector<128x128xbf16>
    %cst_8 = arith.constant dense<0.000000e+00> : vector<16x128xf32>
    %10 = tpu.matmul %8, %9, %cst_8 {dimension_numbers = #tpu.dot_dimension_numbers<[1], [0], [0], [1], [0, 0, 1, 1], [], []>} : vector<16x128xbf16>, vector<128x128xbf16>, vector<16x128xf32> -> vector<16x128xf32>
    %c0_9 = arith.constant 0 : index
    %c0_10 = arith.constant 0 : index
    %11 = vector.load %arg5[%c0_9, %c0_10] : memref<1x128xf32, #tpu.memory_space<vmem>>, vector<1x128xf32>
    %12 = vector.broadcast %11 : vector<1x128xf32> to vector<16x128xf32>
    %13 = arith.addf %10, %12 : vector<16x128xf32>
    %cst_11 = arith.constant 0.000000e+00 : f32
    %14 = vector.broadcast %cst_11 : f32 to vector<16x128xf32>
    %15 = arith.maximumf %13, %14 : vector<16x128xf32>
    %16 = arith.truncf %15 : vector<16x128xf32> to vector<16x128xbf16>
    %c0_12 = arith.constant 0 : index
    %c0_13 = arith.constant 0 : index
    %17 = vector.load %arg6[%c0_12, %c0_13] : memref<128x128xbf16, #tpu.memory_space<vmem>>, vector<128x128xbf16>
    %cst_14 = arith.constant dense<0.000000e+00> : vector<16x128xf32>
    %18 = tpu.matmul %16, %17, %cst_14 {dimension_numbers = #tpu.dot_dimension_numbers<[1], [0], [0], [1], [0, 0, 1, 1], [], []>} : vector<16x128xbf16>, vector<128x128xbf16>, vector<16x128xf32> -> vector<16x128xf32>
    %c0_15 = arith.constant 0 : index
    %c0_16 = arith.constant 0 : index
    %19 = vector.load %arg7[%c0_15, %c0_16] : memref<1x128xf32, #tpu.memory_space<vmem>>, vector<1x128xf32>
    %20 = vector.broadcast %19 : vector<1x128xf32> to vector<16x128xf32>
    %21 = arith.addf %18, %20 : vector<16x128xf32>
    %22 = arith.truncf %21 : vector<16x128xf32> to vector<16x128xbf16>
    %c0_17 = arith.constant 0 : index
    %c0_18 = arith.constant 0 : index
    %23 = vector.load %arg8[%c0_17, %c0_18] : memref<16x128xbf16, #tpu.memory_space<vmem>>, vector<16x128xbf16>
    tpu.vector_store %arg8[%c0_17, %c0_18], %22 {strides = array<i32>} : memref<16x128xbf16, #tpu.memory_space<vmem>>, vector<16x128xbf16>,
    return
  }
  func.func @transform_0(%arg0: i32) -> (i32, i32) {
    %c0_i32 = arith.constant 0 : i32
    %c0_i32_0 = arith.constant 0 : i32
    return %arg0, %c0_i32 : i32, i32
  }
  func.func @transform_1(%arg0: i32) -> (i32, i32) {
    %c0_i32 = arith.constant 0 : i32
    %c0_i32_0 = arith.constant 0 : i32
    %c0_i32_1 = arith.constant 0 : i32
    return %c0_i32, %c0_i32_0 : i32, i32
  }
  func.func @transform_2(%arg0: i32) -> (i32, i32) {
    %c0_i32 = arith.constant 0 : i32
    %c0_i32_0 = arith.constant 0 : i32
    %c0_i32_1 = arith.constant 0 : i32
    return %c0_i32, %c0_i32_0 : i32, i32
  }
  func.func @transform_3(%arg0: i32) -> (i32, i32) {
    %c0_i32 = arith.constant 0 : i32
    %c0_i32_0 = arith.constant 0 : i32
    %c0_i32_1 = arith.constant 0 : i32
    return %c0_i32, %c0_i32_0 : i32, i32
  }
  func.func @transform_4(%arg0: i32) -> (i32, i32) {
    %c0_i32 = arith.constant 0 : i32
    %c0_i32_0 = arith.constant 0 : i32
    %c0_i32_1 = arith.constant 0 : i32
    return %c0_i32, %c0_i32_0 : i32, i32
  }
  func.func @transform_5(%arg0: i32) -> (i32, i32) {
    %c0_i32 = arith.constant 0 : i32
    %c0_i32_0 = arith.constant 0 : i32
    %c0_i32_1 = arith.constant 0 : i32
    return %c0_i32, %c0_i32_0 : i32, i32
  }
  func.func @transform_6(%arg0: i32) -> (i32, i32) {
    %c0_i32 = arith.constant 0 : i32
    %c0_i32_0 = arith.constant 0 : i32
    %c0_i32_1 = arith.constant 0 : i32
    return %c0_i32, %c0_i32_0 : i32, i32
  }
  func.func @transform_7(%arg0: i32) -> (i32, i32) {
    %c0_i32 = arith.constant 0 : i32
    %c0_i32_0 = arith.constant 0 : i32
    return %arg0, %c0_i32 : i32, i32
  }
}

</mosaic_0001>

<bundles_post_ra>
// kernel: tpu_custom_call.1
= control target key start
LH: loop header
LB: loop body
LE: loop exit
PB: predicated region body
PF: predicated region fallthrough
CT: control target
= control target key end

     0   :  { %12 = vsyncpa [#allocation3], 0  ;;  %s1473_s0 = inlined_call_operand.hbm [shape: bf16[8,784], index: 0, kind: input, shape index: {}]   ;;  %s1474_s1 = inlined_call_operand.hbm [shape: bf16[784,128], index: 1, kind: input, shape index: {}]   ;;  %s1475_s2 = inlined_call_operand.vmem [shape: f32[1,128], index: 2, kind: input, shape index: {}]   ;;  %s1476_s3 = inlined_call_operand.hbm [shape: bf16[128,128], index: 3, kind: input, shape index: {}]   ;;  %s1477_s4 = inlined_call_operand.vmem [shape: f32[1,128], index: 4, kind: input, shape index: {}]   ;;  %s1478_s5 = inlined_call_operand.hbm [shape: bf16[128,128], index: 5, kind: input, shape index: {}]   ;;  %s1479_s6 = inlined_call_operand.vmem [shape: f32[1,128], index: 6, kind: input, shape index: {}]   ;;  %s1480_s7 = inlined_call_operand.hbm [shape: bf16[8,128], index: 7, kind: output, shape index: {}]  }
   0x1   :  { %13 = vsyncpa [#allocation6], 0 }
   0x2   :  { %14 = vsyncpa [#allocation9], 0 }
   0x3   :  { %15 = vsyncpa [#allocation4], 0 }
   0x4   :  { %20 = vsyncadd [#allocation3], 448  ;;  %s1363_s24 = smov [#allocation5]  }
   0x5   :  { %s33_s25 = sshll.u32 %s1363_s24, 4  ;;  %s34_s25 = int_to_ptr.vmem [resolvable:$true] %s33_s25 }
   0x6   :  { %s1263_s26 = scalar_lea.vmem %s34_s25, 6272  ;;  %p1268_p1 = scmp.lt.s32.totalorder %s34_s25, %s34_s25 }
   0x7   :  { %p1264_p0 = scmp.ne.s32.totalorder %s34_s25, %s1263_s26  ;;  %p1269_p2 = scmp.lt.s32.totalorder %s1263_s26, %s1263_s26 }
   0x9   :  { %p1270_p3 = por %p1269_p2, %p1268_p1 }
   0xb   :  { %p1271_p4 = pnand %p1270_p3, %p1264_p0 }
   0xd   :  { %1274 = shalt.err (!%p1271_p4)
}
   0xe   :  { %s1364_s27 = smov 64   ;;  %s1365_s28 = smov 4  }
   0xf   :  { %39 = dma.hbm_to_vmem [thread:$0]  %s1474_s1, 6272, %s34_s25, [#allocation6], %s1364_s27, %s1364_s27, %s1365_s28  }
  0x10   :  { %s1366_s8 = smov [#allocation2]  }
  0x11   :  { %s21_s9 = sshll.u32 %s1366_s8, 4  ;;  %s22_s9 = int_to_ptr.vmem [resolvable:$true] %s21_s9 }
  0x12   :  { %s1283_s10 = scalar_lea.vmem %s22_s9, 448  ;;  %s1287_s11 = scalar_lea.vmem %s22_s9, 896 }
  0x13   :  { %p1284_p5 = scmp.ne.s32.totalorder %s22_s9, %s1283_s10  ;;  %p1288_p6 = scmp.lt.s32.totalorder %s22_s9, %s22_s9 }
  0x14   :  { %p1289_p7 = scmp.lt.s32.totalorder %s1287_s11, %s1283_s10 }
  0x16   :  { %p1290_p8 = por %p1289_p7, %p1288_p6 }
  0x18   :  { %p1291_p9 = pnand %p1290_p8, %p1284_p5 }
  0x1a   :  { %1294 = shalt.err (!%p1291_p9)
}
  0x1b   :  { %s1367_s12 = smov 448   ;;  %s1368_s13 = smov 28  }
  0x1c   :  { %27 = dma.hbm_to_vmem [thread:$0]  %s1473_s0, 448, %s22_s9, [#allocation3], %s1367_s12, %s1367_s12, %s1368_s13  }
  0x1d   :  { %s1369_s16 = smov [#allocation7]   ;;  %s1370_s1 = smov [#allocation8]  }
  0x1e   :  { %s47_s17 = sshll.u32 %s1369_s16, 4  ;;  %s61_s18 = sshll.u32 %s1370_s1, 4  ;;  %s48_s17 = int_to_ptr.vmem [resolvable:$true] %s47_s17  ;;  %s62_s18 = int_to_ptr.vmem [resolvable:$true] %s61_s18 }
  0x1f   :  { %s1303_s19 = scalar_lea.vmem %s48_s17, 1024  ;;  %p1308_p11 = scmp.lt.s32.totalorder %s48_s17, %s48_s17 }
  0x20   :  { %p1304_p10 = scmp.ne.s32.totalorder %s48_s17, %s1303_s19  ;;  %p1309_p12 = scmp.lt.s32.totalorder %s1303_s19, %s1303_s19 }
  0x22   :  { %p1310_p13 = por %p1309_p12, %p1308_p11 }
  0x24   :  { %p1311_p0 = pnand %p1310_p13, %p1304_p10 }
  0x26   :  { %1314 = shalt.err (!%p1311_p0)
}
  0x27   :  { %53 = dma.hbm_to_vmem [thread:$0]  %s1476_s3, 1024, %s48_s17, [#allocation6], %s1364_s27, %s1364_s27, %s1365_s28  }
  0x28   :  { %s1323_s0 = scalar_lea.vmem %s62_s18, 1024  ;;  %p1328_p2 = scmp.lt.s32.totalorder %s62_s18, %s62_s18 }
  0x29   :  { %p1324_p1 = scmp.ne.s32.totalorder %s62_s18, %s1323_s0  ;;  %p1329_p3 = scmp.lt.s32.totalorder %s1323_s0, %s1323_s0 }
  0x2b   :  { %p1330_p4 = por %p1329_p3, %p1328_p2 }
  0x2d   :  { %p1331_p5 = pnand %p1330_p4, %p1324_p1 }
  0x2f   :  { %1334 = shalt.err (!%p1331_p5)
}
  0x30   :  { %67 = dma.hbm_to_vmem [thread:$0]  %s1478_s5, 1024, %s62_s18, [#allocation9], %s1364_s27, %s1364_s27, %s1365_s28  }
  0x31   :  { %1355 = dma.done.wait [#allocation3], 896  }
  0x32   :  { %1356 = vsyncadd [#allocation3], 4294966400 }
  0x33   :  { %1357 = dma.done.wait [#allocation6], 7296  }
  0x34   :  { %1358 = vsyncadd [#allocation6], 4294960000 }
  0x35   :  { %1359 = dma.done.wait [#allocation9], 1024  }
  0x36   :  { %1360 = vsyncadd [#allocation9], 4294966272  ;;  %v1180_v0 = vld [vmem:[#allocation5 + $0x78] sm:$0xff]   ;;  %v1184_v4 = vld [vmem:[#allocation5 + $0x70] sm:$0xff]   ;;  %v1371_v38 = vmov 0.0   ;;  %vm1372_vm0 = vmmov 0  }
  0x37   :  { %v1181_v1 = vld [vmem:[#allocation5 + $0x38] sm:$0xff]   ;;  %1037 = vmatprep.subr.bf16.mxu0 %v1180_v0  ;;  %v1185_v5 = vld [vmem:[#allocation5 + $0x30] sm:$0xff]   ;;  %v1188_v8 = vld [vmem:[#allocation5 + $0x68] sm:$0xff]   ;;  %vm525_vm1 = vcmask 130048  }
  0x38   :  { %v1182_v2 = vld [vmem:[#allocation5 + $0xf8] sm:$0xff]   ;;  %1038 = vmatpush3.bf16.msra.mxu0 %v1181_v1  ;;  %v1186_v6 = vld [vmem:[#allocation5 + $0xf0] sm:$0xff]   ;;  %v1189_v9 = vld [vmem:[#allocation5 + $0x28] sm:$0xff]  }
  0x39   :  { %v1183_v3 = vld [vmem:[#allocation5 + $0xb8] sm:$0xff]   ;;  %1059 = vmatprep.subr.bf16.mxu1 %v1182_v2  ;;  %1039 = vmatprep.subr.bf16.mxu0 %v1184_v4  ;;  %v1187_v7 = vld [vmem:[#allocation5 + $0xb0] sm:$0xff]   ;;  %v1190_v10 = vld [vmem:[#allocation5 + $0xe8] sm:$0xff]  }
  0x3a   :  { %1060 = vmatpush3.bf16.msra.mxu1 %v1183_v3  ;;  %v1191_v11 = vld [vmem:[#allocation5 + $0xa8] sm:$0xff]   ;;  %v1192_v12 = vld [vmem:[#allocation5 + $0x60] sm:$0xff]   ;;  %v1196_v16 = vld [vmem:[#allocation5 + $0x58] sm:$0xff]  }
  0x3b   :  { %1061 = vmatprep.subr.bf16.mxu1 %v1186_v6  ;;  %v1193_v13 = vld [vmem:[#allocation5 + $0x20] sm:$0xff]   ;;  %v1197_v17 = vld [vmem:[#allocation5 + $0x18] sm:$0xff]   ;;  %v1200_v20 = vld [vmem:[#allocation5 + $0x50] sm:$0xff]  }
  0x3c   :  { %1040 = vmatpush3.bf16.msra.mxu0 %v1185_v5  ;;  %v1194_v14 = vld [vmem:[#allocation5 + $0xe0] sm:$0xff]   ;;  %v1198_v18 = vld [vmem:[#allocation5 + $0xd8] sm:$0xff]   ;;  %v1201_v21 = vld [vmem:[#allocation5 + $0x10] sm:$0xff]  }
  0x3d   :  { %1041 = vmatprep.subr.bf16.mxu0 %v1188_v8  ;;  %v1195_v15 = vld [vmem:[#allocation5 + $0xa0] sm:$0xff]   ;;  %v1199_v19 = vld [vmem:[#allocation5 + $0x98] sm:$0xff]   ;;  %v1202_v22 = vld [vmem:[#allocation5 + $0xd0] sm:$0xff]  }
  0x3e   :  { %1062 = vmatpush3.bf16.msra.mxu1 %v1187_v7  ;;  %v1203_v23 = vld [vmem:[#allocation5 + $0x90] sm:$0xff]   ;;  %v1204_v24 = vld [vmem:[#allocation5 + $0x48] sm:$0xff]   ;;  %v1208_v28 = vld [vmem:[#allocation5 + $0x40] sm:$0xff]  }
  0x3f   :  { %1063 = vmatprep.subr.bf16.mxu1 %v1190_v10  ;;  %v1205_v25 = vld [vmem:[#allocation5 + $0x8] sm:$0xff]   ;;  %v1209_v29 = vld [vmem:[#allocation5] sm:$0xff]   ;;  %v1215_v34 = vld [vmem:[#allocation5 + $0x178] sm:$0xff]  }
  0x40   :  { %1042 = vmatpush3.bf16.msra.mxu0 %v1189_v9  ;;  %v1206_v26 = vld [vmem:[#allocation5 + $0xc8] sm:$0xff]   ;;  %v1210_v30 = vld [vmem:[#allocation5 + $0xc0] sm:$0xff]   ;;  %v1218_v36 = vld [vmem:[#allocation2 + $0xc] ss:$28 sps:$4 sm:$0xff]  }
  0x41   :  { %1043 = vmatprep.subr.bf16.mxu0 %v1192_v12  ;;  %v1207_v27 = vld [vmem:[#allocation5 + $0x88] sm:$0xff]   ;;  %v1214_v33 = vld [vmem:[#allocation5 + $0x80] sm:$0xff]   ;;  %v1219_v37 = vld [vmem:[#allocation5 + $0x138] sm:$0xff]   ;;  %602 = vmatprep.mubr.bf16.mxu1 %v1218_v36 }
  0x42   :  { %1064 = vmatpush3.bf16.msra.mxu1 %v1191_v11  ;;  %v1211_v31 = vld [vmem:[#allocation2] ss:$28 sps:$4 sm:$0xff]   ;;  %v1216_v35 = vld [vmem:[#allocation2 + $0x8] ss:$28 sps:$4 sm:$0xff]   ;;  %v1226_v45 = vld [vmem:[#allocation5 + $0x158] sm:$0xff]  }
  0x43   :  { %1065 = vmatprep.subr.bf16.mxu1 %v1194_v14  ;;  %v1213_v32 = vld [vmem:[#allocation2 + $0x4] ss:$28 sps:$4 sm:$0xff]   ;;  %v1220_v39 = vld [vmem:[#allocation5 + $0x170] sm:$0xff]   ;;  %v1224_v43 = vld [vmem:[#allocation5 + $0x160] sm:$0xff]  }
  0x44   :  { %1044 = vmatpush3.bf16.msra.mxu0 %v1193_v13  ;;  %561 = vmatprep.mubr.bf16.mxu0 %v1213_v32  ;;  %v1221_v40 = vld [vmem:[#allocation5 + $0x130] sm:$0xff]   ;;  %v1222_v41 = vld [vmem:[#allocation5 + $0x168] sm:$0xff]   ;;  %v1225_v44 = vld [vmem:[#allocation5 + $0x120] sm:$0xff]  }
  0x45   :  { %1045 = vmatprep.subr.bf16.mxu0 %v1196_v16  ;;  %v1223_v42 = vld [vmem:[#allocation5 + $0x128] sm:$0xff]   ;;  %v1227_v46 = vld [vmem:[#allocation5 + $0x118] sm:$0xff]   ;;  %v1228_v47 = vld [vmem:[#allocation5 + $0x150] sm:$0xff]  }
  0x46   :  { %1066 = vmatpush3.bf16.msra.mxu1 %v1195_v15  ;;  %v1234_v48 = vld [vmem:[#allocation5 + $0x180] sm:$0xff]   ;;  %v1229_v49 = vld [vmem:[#allocation5 + $0x110] sm:$0xff]   ;;  %v1237_v50 = vld [vmem:[#allocation2 + $0x14] ss:$28 sps:$4 sm:$0xff]  }
  0x47   :  { %1067 = vmatprep.subr.bf16.mxu1 %v1198_v18  ;;  %v1230_v51 = vld [vmem:[#allocation5 + $0x148] sm:$0xff]   ;;  %v1238_v52 = vld [vmem:[#allocation2 + $0x18] ss:$28 sps:$4 sm:$0xff]   ;;  %v1235_v56 = vld [vmem:[#allocation2 + $0x10] ss:$28 sps:$4 sm:$0xff]  }
  0x48   :  { %1046 = vmatpush3.bf16.msra.mxu0 %v1197_v17  ;;  %v1231_v53 = vld [vmem:[#allocation5 + $0x108] sm:$0xff]   ;;  %v1232_v54 = vld [vmem:[#allocation5 + $0x140] sm:$0xff]   ;;  %v1240_v58 = vld [vmem:[#allocation7 + $0x30] sm:$0xff]  }
  0x49   :  { %1047 = vmatprep.subr.bf16.mxu0 %v1200_v20  ;;  %v1233_v55 = vld [vmem:[#allocation5 + $0x100] sm:$0xff]   ;;  %v1241_v59 = vld [vmem:[#allocation7 + $0x28] sm:$0xff]   ;;  %v1242_v60 = vld [vmem:[#allocation7 + $0x20] sm:$0xff]  }
  0x4a   :  { %1068 = vmatpush3.bf16.msra.mxu1 %v1199_v19  ;;  %v1239_v57 = vld [vmem:[#allocation7 + $0x38] sm:$0xff]   ;;  %v1244_v62 = vld [vmem:[#allocation7 + $0x10] sm:$0xff]   ;;  %v1245_v63 = vld [vmem:[#allocation7 + $0x8] sm:$0xff]  }
  0x4b   :  { %1069 = vmatprep.subr.bf16.mxu1 %v1202_v22  ;;  %v1243_v61 = vld [vmem:[#allocation7 + $0x18] sm:$0xff]   ;;  %v1246_v0 = vld [vmem:[#allocation7] sm:$0xff]   ;;  %v1248_v2 = vld [vmem:[#allocation8 + $0x30] sm:$0xff]  }
  0x4c   :  { %1048 = vmatpush3.bf16.msra.mxu0 %v1201_v21  ;;  %v1247_v1 = vld [vmem:[#allocation8 + $0x38] sm:$0xff]   ;;  %v1249_v3 = vld [vmem:[#allocation8 + $0x28] sm:$0xff]   ;;  %v1250_v4 = vld [vmem:[#allocation8 + $0x20] sm:$0xff]  }
  0x4d   :  { %1049 = vmatprep.subr.bf16.mxu0 %v1204_v24  ;;  %v1251_v5 = vld [vmem:[#allocation8 + $0x18] sm:$0xff]   ;;  %v952_v18 = vld [vmem:[%s1475_s2] ss:$0 sm:$0xff] }
  0x4e   :  { %1070 = vmatpush3.bf16.msra.mxu1 %v1203_v23 }
  0x4f   :  { %1071 = vmatprep.subr.bf16.mxu1 %v1206_v26 }
  0x50   :  { %1050 = vmatpush3.bf16.msra.mxu0 %v1205_v25 }
  0x51   :  { %1051 = vmatprep.subr.bf16.mxu0 %v1208_v28 }
  0x52   :  { %1072 = vmatpush3.bf16.msra.mxu1 %v1207_v27 }
  0x53   :  { %1073 = vmatprep.subr.bf16.mxu1 %v1210_v30 }
  0x54   :  { %1052 = vmatpush3.bf16.msra.mxu0 %v1209_v29 }
  0x55   :  { %1081 = vmatprep.subr.bf16.mxu0 %v1215_v34 }
  0x56   :  { %1074 = vmatpush3.bf16.msra.mxu1 %v1214_v33 }
  0x57   :  { %562 = vmatmul.mubr.bf16.vlgmr.msra.gmra.mxu0 %v1211_v31  ;;  %1123 = vmatprep.subr.bf16.mxu1 %v1371_v38 }
  0x58   :  { %1082 = vmatpush3.bf16.msra.mxu0 %v1219_v37  ;;  %643 = vmatprep.mubr.bf16.mxu0 %v1237_v50 }
  0x59   :  { %603 = vmatmul.mubr.bf16.vlgmr.msra.gmra.mxu1 %v1216_v35  ;;  %1083 = vmatprep.subr.bf16.mxu0 %v1220_v39 }
  0x5a   :  { %1125 = vmatprep.mubr.msk.bf16.mxu1 %vm1372_vm0, %v1371_v38  ;;  %1124 = vmatpush3.bf16.msra.mxu1 %v1234_v48 }
  0x5b   :  { %1129 = vmatprep.subr.bf16.mxu1 %v1371_v38 }
  0x5c   :  { %1084 = vmatpush3.bf16.msra.mxu0 %v1221_v40 }
  0x5d   :  { %1085 = vmatprep.subr.bf16.mxu0 %v1222_v41  ;;  %v1252_v41 = vld [vmem:[#allocation8 + $0x10] sm:$0xff]  }
  0x60   :  { %1086 = vmatpush3.bf16.msra.mxu0 %v1223_v42  ;;  %v1253_v42 = vld [vmem:[#allocation8 + $0x8] sm:$0xff]  }
  0x61   :  { %1087 = vmatprep.subr.bf16.mxu0 %v1224_v43  ;;  %1126 = vmatmul.mubr.msk.bf16.vlgmr.msra.gmra.mxu1 %vm525_vm1, %v1238_v52  ;;  %v1254_v43 = vld [vmem:[#allocation8] sm:$0xff]  }
  0x62   :  { %1145 = vmatprep.mubr.msk.bf16.mxu1 %vm1372_vm0, %v1371_v38  ;;  %1130 = vmatpush3.bf16.msra.mxu1 %v1239_v57 }
  0x63   :  { %1131 = vmatprep.subr.bf16.mxu1 %v1371_v38 }
  0x64   :  { %1088 = vmatpush3.bf16.msra.mxu0 %v1225_v44  ;;  %v1010_v44 = vld [vmem:[%s1477_s4] ss:$0 sm:$0xff] }
  0x65   :  { %1089 = vmatprep.subr.bf16.mxu0 %v1226_v45 }
  0x66   :  { %1132 = vmatpush3.bf16.msra.mxu1 %v1240_v58 }
  0x67   :  { %1133 = vmatprep.subr.bf16.mxu1 %v1371_v38 }
  0x68   :  { %1090 = vmatpush3.bf16.msra.mxu0 %v1227_v46 }
  0x69   :  { %1091 = vmatprep.subr.bf16.mxu0 %v1228_v47 }
  0x6a   :  { %1134 = vmatpush3.bf16.msra.mxu1 %v1241_v59 }
  0x6b   :  { %1135 = vmatprep.subr.bf16.mxu1 %v1371_v38 }
  0x6c   :  { %1092 = vmatpush3.bf16.msra.mxu0 %v1229_v49 }
  0x6d   :  { %1093 = vmatprep.subr.bf16.mxu0 %v1230_v51 }
  0x6e   :  { %1136 = vmatpush3.bf16.msra.mxu1 %v1242_v60 }
  0x6f   :  { %1137 = vmatprep.subr.bf16.mxu1 %v1371_v38 }
  0x70   :  { %1094 = vmatpush3.bf16.msra.mxu0 %v1231_v53 }
  0x71   :  { %1095 = vmatprep.subr.bf16.mxu0 %v1232_v54 }
  0x72   :  { %1138 = vmatpush3.bf16.msra.mxu1 %v1243_v61 }
  0x73   :  { %1139 = vmatprep.subr.bf16.mxu1 %v1371_v38 }
  0x74   :  { %1096 = vmatpush3.bf16.msra.mxu0 %v1233_v55 }
  0x75   :  { %1149 = vmatprep.subr.bf16.mxu0 %v1371_v38 }
  0x76   :  { %1140 = vmatpush3.bf16.msra.mxu1 %v1244_v62 }
  0x77   :  { %644 = vmatmul.mubr.bf16.vlgmr.msra.gmra.mxu0 %v1235_v56  ;;  %1141 = vmatprep.subr.bf16.mxu1 %v1371_v38 }
  0x78   :  { %1165 = vmatprep.mubr.msk.bf16.mxu0 %vm1372_vm0, %v1371_v38  ;;  %1150 = vmatpush3.bf16.msra.mxu0 %v1247_v1 }
  0x79   :  { %1151 = vmatprep.subr.bf16.mxu0 %v1371_v38 }
  0x7a   :  { %1142 = vmatpush3.bf16.msra.mxu1 %v1245_v63 }
  0x7b   :  { %1143 = vmatprep.subr.bf16.mxu1 %v1371_v38 }
  0x7c   :  { %1152 = vmatpush3.bf16.msra.mxu0 %v1248_v2 }
  0x7d   :  { %1153 = vmatprep.subr.bf16.mxu0 %v1371_v38 }
  0x7e   :  { %1144 = vmatpush3.bf16.msra.mxu1 %v1246_v0 }
  0x80   :  { %1154 = vmatpush3.bf16.msra.mxu0 %v1249_v3 }
  0x81   :  { %1155 = vmatprep.subr.bf16.mxu0 %v1371_v38 }
  0x84   :  { %1156 = vmatpush3.bf16.msra.mxu0 %v1250_v4 }
  0x85   :  { %1157 = vmatprep.subr.bf16.mxu0 %v1371_v38 }
  0x88   :  { %1158 = vmatpush3.bf16.msra.mxu0 %v1251_v5 }
  0x89   :  { %1159 = vmatprep.subr.bf16.mxu0 %v1371_v38 }
  0x8c   :  { %1160 = vmatpush3.bf16.msra.mxu0 %v1252_v41 }
  0x8d   :  { %1161 = vmatprep.subr.bf16.mxu0 %v1371_v38 }
  0x90   :  { %1162 = vmatpush3.bf16.msra.mxu0 %v1253_v42 }
  0x91   :  { %1163 = vmatprep.subr.bf16.mxu0 %v1371_v38  ;;  %v1019_v38 = vld [vmem:[%s1479_s6] ss:$0 sm:$0xff] }
  0x94   :  { %1164 = vmatpush3.bf16.msra.mxu0 %v1254_v43 }
 0x117   :  { %v1053_v9 = vpop.f32.mrf.mxu0 }
 0x119   :  { %v1075_v6 = vpop.f32.mrf.mxu1  ;;  %v1054_v12 = vpop.f32.mrf.mxu0 }
 0x11a   :  { %v1055_v17 = vadd.f32 %v1054_v12, %v1053_v9 }
 0x11b   :  { %v1076_v7 = vpop.f32.mrf.mxu1  ;;  %v1056_v15 = vpop.f32.mrf.mxu0 }
 0x11c   :  { %v564_v20 = vadd.f32 %v1055_v17, %v952_v18  ;;  %v1077_v21 = vadd.f32 %v1076_v7, %v1075_v6 }
 0x11d   :  { %v1078_v8 = vpop.f32.mrf.mxu1  ;;  %v1057_v19 = vpop.f32.mrf.mxu0 }
 0x11e   :  { %v1058_v22 = vadd.f32 %v1057_v19, %v1056_v15  ;;  %v605_v25 = vadd.f32 %v1077_v21, %v564_v20 }
 0x11f   :  { %v1079_v10 = vpop.f32.mrf.mxu1 }
 0x120   :  { %v567_v26 = vadd.f32 %v1058_v22, %v952_v18  ;;  %v1080_v27 = vadd.f32 %v1079_v10, %v1078_v8 }
 0x121   :  { %v686_v11 = vpop.f32.mrf.mxu1 }
 0x122   :  { %v608_v32 = vadd.f32 %v1080_v27, %v567_v26 }
 0x123   :  { %v1127_v13 = vpop.f32.mrf.mxu1 }
 0x125   :  { %v689_v14 = vpop.f32.mrf.mxu1 }
 0x127   :  { %v1128_v16 = vpop.f32.mrf.mxu1 }
 0x137   :  { %v1097_v23 = vpop.f32.mrf.mxu0 }
 0x139   :  { %v1098_v24 = vpop.f32.mrf.mxu0 }
 0x13a   :  { %v1099_v28 = vadd.f32 %v1098_v24, %v1097_v23 }
 0x13b   :  { %v1100_v29 = vpop.f32.mrf.mxu0 }
 0x13c   :  { %v646_v30 = vadd.f32 %v1099_v28, %v605_v25 }
 0x13d   :  { %v1101_v31 = vpop.f32.mrf.mxu0 }
 0x13e   :  { %v1102_v33 = vadd.f32 %v1101_v31, %v1100_v29  ;;  %v687_v34 = vadd.f32 %v686_v11, %v646_v30 }
 0x140   :  { %v649_v35 = vadd.f32 %v1102_v33, %v608_v32  ;;  %v693_v37 = vmax.f32 %v687_v34, 0.0 }
 0x142   :  { %v690_v36 = vadd.f32 %v689_v14, %v649_v35 }
 0x144   :  { %v694_v39 = vmax.f32 %v690_v36, 0.0 }
 0x146   :  { %v695_v40 = vpack.c.bf16 %v694_v39, %v693_v37 }
 0x148   :  { %1146 = vmatmul.mubr.bf16.vlgmr.msra.gmra.mxu1 %v695_v40 }
 0x208   :  { %v801_v45 = vpop.f32.mrf.mxu1 }
 0x209   :  { %v802_v47 = vadd.f32 %v1010_v44, %v801_v45 }
 0x20a   :  { %v1147_v46 = vpop.f32.mrf.mxu1 }
 0x20b   :  { %v808_v51 = vmax.f32 %v802_v47, 0.0 }
 0x20c   :  { %v804_v48 = vpop.f32.mrf.mxu1 }
 0x20d   :  { %v805_v49 = vadd.f32 %v1010_v44, %v804_v48 }
 0x20e   :  { %v1148_v50 = vpop.f32.mrf.mxu1 }
 0x20f   :  { %v809_v52 = vmax.f32 %v805_v49, 0.0 }
 0x211   :  { %v810_v53 = vpack.c.bf16 %v809_v52, %v808_v51 }
 0x213   :  { %1166 = vmatmul.mubr.bf16.vlgmr.msra.gmra.mxu0 %v810_v53 }
 0x2d3   :  { %v916_v54 = vpop.f32.mrf.mxu0 }
 0x2d4   :  { %v917_v57 = vadd.f32 %v1019_v38, %v916_v54 }
 0x2d5   :  { %v1167_v55 = vpop.f32.mrf.mxu0 }
 0x2d7   :  { %v919_v56 = vpop.f32.mrf.mxu0 }
 0x2d8   :  { %v920_v58 = vadd.f32 %v1019_v38, %v919_v56 }
 0x2d9   :  { %v1168_v59 = vpop.f32.mrf.mxu0 }
 0x2da   :  { %v1035_v60 = vpack.c.bf16 %v920_v58, %v917_v57 }
 0x2dc   :  { %1036 = vst [vmem:[#allocation10] sm:$0xff] %v1035_v60  }
 0x2dd   :  { %937 = vsyncadd [#allocation4], 64  ;;  %s1373_s4 = smov [#allocation10]  }
 0x2de   :  { %s938_s29 = sshll.u32 %s1373_s4, 4  ;;  %s939_s29 = int_to_ptr.vmem [resolvable:$true] %s938_s29 }
 0x2df   :  { %s1335_s30 = scalar_lea.vmem %s939_s29, 64  ;;  %s1339_s8 = scalar_lea.vmem %s939_s29, 128 }
 0x2e0   :  { %p1336_p6 = scmp.ne.s32.totalorder %s939_s29, %s1335_s30  ;;  %p1340_p7 = scmp.lt.s32.totalorder %s939_s29, %s939_s29 }
 0x2e1   :  { %p1341_p8 = scmp.lt.s32.totalorder %s1339_s8, %s1335_s30 }
 0x2e3   :  { %p1342_p9 = por %p1341_p8, %p1340_p7 }
 0x2e5   :  { %p1343_p10 = pnand %p1342_p9, %p1336_p6 }
 0x2e7   :  { %1346 = shalt.err (!%p1343_p10)
}
 0x2e8   :  { %944 = dma.vmem_to_hbm [thread:$0]  %s939_s29, 64, %s1480_s7, [#allocation4], %s1364_s27, %s1364_s27, %s1365_s28  }
 0x2e9   :  { %1361 = dma.done.wait [#allocation4], 128  }
 0x2ea   :  { %1362 = vsyncadd [#allocation4], 4294967168 }
 0x2eb   :  { %948 = vsyncpa [#allocation3], 1 }
 0x2ec   :  { %949 = vsyncpa [#allocation6], 1 }
 0x2ed   :  { %950 = vsyncpa [#allocation9], 1 }
 0x2ee   :  { %951 = vsyncpa [#allocation4], 1 }

</bundles_post_ra>
